<compile_context>
chip_gen: v5e
topology: v5e:2x2
jax: 0.10.0
libtpu: 0.0.40
codegen_flags: <defaults>
</compile_context>

<pallas_src>
import jax
import jax.numpy as jnp
from jax.experimental import pallas as pl
from jax.experimental.pallas import tpu as pltpu


def _vdrop_mul_kernel(x_ref, m_ref, o_ref):
    # Pure elementwise broadcast-multiply.  The mask block has a constant
    # index_map, so Pallas keeps it resident and re-uses it for every tile.
    o_ref[...] = (x_ref[...] * m_ref[...]).astype(o_ref.dtype)


def _choose_tile_rows(n_rows, row_bytes, target_bytes=2 * 1024 * 1024):
    """Rows per tile: ~2 MiB tiles, multiple of 8 (sublane) unless full dim."""
    t = max(8, (int(target_bytes) // max(int(row_bytes), 1)) // 8 * 8)
    # If t >= n_rows we take the full dimension (always legal); otherwise t is
    # a multiple of 8 which satisfies the (8, 128) block constraint.
    return int(min(t, n_rows))


def _vdrop_seq_major(x, mask_bh, keep_prob):
    """x: (T, B, H); mask_bh: (B, H) {0,1} keep-mask. Mask shared over time."""
    T, B, H = x.shape
    x2 = x.reshape(T, B * H)  # free: row-major contiguous, lane-dense last dim
    m2 = (mask_bh.reshape(1, B * H).astype(jnp.float32)
          * (1.0 / keep_prob)).astype(x.dtype)
    tile_t = _choose_tile_rows(T, B * H * x.dtype.itemsize)

    out = pl.pallas_call(
        _vdrop_mul_kernel,
        out_shape=jax.ShapeDtypeStruct((T, B * H), x.dtype),
        grid_spec=pltpu.PrefetchScalarGridSpec(
            num_scalar_prefetch=0,
            grid=(pl.cdiv(T, tile_t),),
            in_specs=[
                pl.BlockSpec((tile_t, B * H), lambda t: (t, 0)),
                pl.BlockSpec((1, B * H), lambda t: (0, 0)),  # mask: resident
            ],
            out_specs=pl.BlockSpec((tile_t, B * H), lambda t: (t, 0)),
        ),
        compiler_params=pltpu.CompilerParams(
            dimension_semantics=("parallel",),
        ),
    )(x2, m2)
    return out.reshape(T, B, H)


def _vdrop_batch_first(x, mask_bh, keep_prob):
    """x: (B, T, H); mask_bh: (B, H) {0,1} keep-mask. Mask shared over seq."""
    B, T, H = x.shape
    m3 = (mask_bh.reshape(B, 1, H).astype(jnp.float32)
          * (1.0 / keep_prob)).astype(x.dtype)
    tile_t = _choose_tile_rows(T, H * x.dtype.itemsize)

    out = pl.pallas_call(
        _vdrop_mul_kernel,
        out_shape=jax.ShapeDtypeStruct((B, T, H), x.dtype),
        grid_spec=pltpu.PrefetchScalarGridSpec(
            num_scalar_prefetch=0,
            grid=(B, pl.cdiv(T, tile_t)),
            in_specs=[
                pl.BlockSpec((1, tile_t, H), lambda b, t: (b, t, 0)),
                pl.BlockSpec((1, 1, H), lambda b, t: (b, 0, 0)),  # per-b mask
            ],
            out_specs=pl.BlockSpec((1, tile_t, H), lambda b, t: (b, t, 0)),
        ),
        compiler_params=pltpu.CompilerParams(
            dimension_semantics=("parallel", "parallel"),
        ),
    )(x, m3)
    return out


def variational_dropout(x, key, *, p=0.5, training=True, batch_first=False):
    """JAX/Pallas equivalent of VariationalDropout.forward.

    batch_first=False: x (T, B, H), mask (1, B, H)
    batch_first=True : x (B, T, H), mask (B, 1, H)
    """
    if (not training) or p == 0.0:
        return x
    keep_prob = 1.0 - float(p)
    if batch_first:
        B, _, H = x.shape
    else:
        _, B, H = x.shape
    # One Bernoulli(1-p) mask per (batch, hidden), shared across the sequence.
    # Tiny (B*H elements) -> generated with plain JAX; the heavy broadcast
    # multiply over the full (seq, batch, hidden) tensor runs in the kernel.
    mask_bh = jax.random.bernoulli(key, keep_prob, (B, H))
    if batch_first:
        return _vdrop_batch_first(x, mask_bh, keep_prob)
    return _vdrop_seq_major(x, mask_bh, keep_prob)


if __name__ == "__main__":
    key = jax.random.PRNGKey(0)
    kx, km, km2 = jax.random.split(key, 3)
    T, B, H = 8, 4, 32
    p = 0.5
    # strictly positive inputs so the implied mask can be recovered as out / x
    x = jax.random.uniform(kx, (T, B, H), dtype=jnp.float32, minval=1.0, maxval=2.0)

    # --- seq-major (batch_first=False, the default) ---
    out = variational_dropout(x, km, p=p, training=True, batch_first=False)
    out = jax.block_until_ready(out)
    assert out.shape == x.shape and out.dtype == x.dtype
    ratio = out / x
    m0 = ratio[0]
    assert bool(jnp.all(jnp.abs(ratio - m0[None]) < 1e-5)), "mask not shared over time"
    valid = jnp.logical_or(jnp.abs(m0) < 1e-5,
                           jnp.abs(m0 - 1.0 / (1.0 - p)) < 1e-5)
    assert bool(jnp.all(valid)), "mask values not in {0, 1/(1-p)}"

    # --- batch_first=True: (B, T, H), mask shared over the seq axis ---
    xb = jnp.transpose(x, (1, 0, 2))
    outb = variational_dropout(xb, km2, p=p, training=True, batch_first=True)
    outb = jax.block_until_ready(outb)
    assert outb.shape == xb.shape and outb.dtype == xb.dtype
    ratiob = outb / xb
    mb0 = ratiob[:, 0]
    assert bool(jnp.all(jnp.abs(ratiob - mb0[:, None]) < 1e-5)), \
        "mask not shared over seq (batch_first)"
    validb = jnp.logical_or(jnp.abs(mb0) < 1e-5,
                            jnp.abs(mb0 - 1.0 / (1.0 - p)) < 1e-5)
    assert bool(jnp.all(validb)), "batch_first mask values not in {0, 1/(1-p)}"

    # eval mode / p == 0 are identity (pure glue, no kernel launch)
    out_eval = variational_dropout(x, km, p=p, training=False)
    assert bool(jnp.all(out_eval == x))
    out_p0 = variational_dropout(x, km, p=0.0, training=True)
    assert bool(jnp.all(out_p0 == x))

    print("KERNEL_OK")
</pallas_src>

<mosaic_0001>
module attributes {stable_mosaic.version = 11 : i64} {
  func.func @_vdrop_mul_kernel(%arg0: i32, %arg1: memref<8x128xf32, #tpu.memory_space<vmem>>, %arg2: memref<1x128xf32, #tpu.memory_space<vmem>>, %arg3: memref<8x128xf32, #tpu.memory_space<vmem>>) attributes {dimension_semantics = [#tpu.dimension_semantics<parallel>], iteration_bounds = array<i64: 1>, scalar_prefetch = 0 : i64, scratch_operands = 0 : i64, tpu.core_type = #tpu.core_type<tc>, window_params = [{transform_indices = @transform_0, window_bounds = array<i64: 8, 128>}, {pipeline_mode = #tpu.pipeline_mode<synchronous>, transform_indices = @transform_1, window_bounds = array<i64: 1, 128>}, {transform_indices = @transform_2, window_bounds = array<i64: 8, 128>}]} {
    %c0 = arith.constant 0 : index
    %c0_0 = arith.constant 0 : index
    %0 = vector.load %arg1[%c0, %c0_0] : memref<8x128xf32, #tpu.memory_space<vmem>>, vector<8x128xf32>
    %c0_1 = arith.constant 0 : index
    %c0_2 = arith.constant 0 : index
    %1 = vector.load %arg2[%c0_1, %c0_2] : memref<1x128xf32, #tpu.memory_space<vmem>>, vector<1x128xf32>
    %2 = vector.broadcast %1 : vector<1x128xf32> to vector<8x128xf32>
    %3 = arith.mulf %0, %2 : vector<8x128xf32>
    %c0_3 = arith.constant 0 : index
    %c0_4 = arith.constant 0 : index
    %4 = vector.load %arg3[%c0_3, %c0_4] : memref<8x128xf32, #tpu.memory_space<vmem>>, vector<8x128xf32>
    tpu.vector_store %arg3[%c0_3, %c0_4], %3 {strides = array<i32>} : memref<8x128xf32, #tpu.memory_space<vmem>>, vector<8x128xf32>,
    return
  }
  func.func @transform_0(%arg0: i32) -> (i32, i32) {
    %c0_i32 = arith.constant 0 : i32
    %c0_i32_0 = arith.constant 0 : i32
    return %arg0, %c0_i32 : i32, i32
  }
  func.func @transform_1(%arg0: i32) -> (i32, i32) {
    %c0_i32 = arith.constant 0 : i32
    %c0_i32_0 = arith.constant 0 : i32
    %c0_i32_1 = arith.constant 0 : i32
    return %c0_i32, %c0_i32_0 : i32, i32
  }
  func.func @transform_2(%arg0: i32) -> (i32, i32) {
    %c0_i32 = arith.constant 0 : i32
    %c0_i32_0 = arith.constant 0 : i32
    return %arg0, %c0_i32 : i32, i32
  }
}

</mosaic_0001>

<bundles_post_ra>
// kernel: tpu_custom_call.1
= control target key start
LH: loop header
LB: loop body
LE: loop exit
PB: predicated region body
PF: predicated region fallthrough
CT: control target
= control target key end

     0   :  { %7 = vsyncpa [#allocation3], 0  ;;  %s174_s0 = inlined_call_operand.hbm [shape: f32[8,128], index: 0, kind: input, shape index: {}]   ;;  %s175_s1 = inlined_call_operand.hbm [shape: f32[1,128], index: 1, kind: input, shape index: {}]   ;;  %s176_s2 = inlined_call_operand.hbm [shape: f32[8,128], index: 2, kind: output, shape index: {}]  }
   0x1   :  { %8 = vsyncpa [#allocation6], 0 }
   0x2   :  { %9 = vsyncpa [#allocation4], 0  ;;  %s15_s11 = sshll.u32 %s174_s0, 4  ;;  %s147_s12 = smov [#allocation2]   ;;  %s16_s11 = int_to_ptr.hbm [resolvable:$true] %s15_s11 }
   0x3   :  { %s17_s13 = sshll.u32 %s147_s12, 4  ;;  %s26_s16 = sshll.u32 %s175_s1, 4  ;;  %s18_s13 = int_to_ptr.vmem [resolvable:$true] %s17_s13  ;;  %s27_s16 = int_to_ptr.hbm [resolvable:$true] %s26_s16 }
   0x4   :  { %20 = dma.hbm_to_vmem [thread:$0]  %s16_s11, 128, %s18_s13, [#allocation3]  }
   0x5   :  { %s148_s17 = smov [#allocation5]  }
   0x6   :  { %s28_s18 = sshll.u32 %s148_s17, 4  ;;  %s29_s18 = int_to_ptr.vmem [resolvable:$true] %s28_s18 }
   0x7   :  { %31 = dma.hbm_to_vmem [thread:$0]  %s27_s16, 16, %s29_s18, [#allocation6]  }
   0x8   :  { %141 = dma.done.wait [#allocation3], 128  }
   0x9   :  { %142 = vsyncadd [#allocation3], 4294967168 }
   0xa   :  { %143 = dma.done.wait [#allocation6], 16  }
   0xb   :  { %144 = vsyncadd [#allocation6], 4294967280  ;;  %s149_s19 = smov [#allocation7]   ;;  %s54_s22 = sshll.u32 %s176_s2, 4  ;;  %v40_v0 = vld [vmem:[#allocation2] sm:$0xff]  ;;  %s55_s22 = int_to_ptr.hbm [resolvable:$true] %s54_s22 }
   0xc   :  { %s52_s0 = sshll.u32 %s149_s19, 4  ;;  %v68_v1 = vld [vmem:[#allocation5] ss:$0 sm:$0xff]  ;;  %s53_s0 = int_to_ptr.vmem [resolvable:$true] %s52_s0 }
   0xd   :  { %v45_v2 = vmul.f32 %v68_v1, %v40_v0 }
   0xf   :  { %46 = vst [vmem:[#allocation7] sm:$0xff] %v45_v2 }
  0x10   :  { %57 = dma.vmem_to_hbm [thread:$0]  %s53_s0, 128, %s55_s22, [#allocation4]  }
  0x11   :  { %145 = dma.done.wait [#allocation4], 128  }
  0x12   :  { %146 = vsyncadd [#allocation4], 4294967168 }
  0x13   :  { %62 = vsyncpa [#allocation3], 1 }
  0x14   :  { %63 = vsyncpa [#allocation6], 1 }
  0x15   :  { %64 = vsyncpa [#allocation4], 1 }

</bundles_post_ra>
